<compile_context>
chip_gen: v5e
topology: v5e:2x2
jax: 0.10.0
libtpu: 0.0.40
codegen_flags: <defaults>
</compile_context>

<pallas_src>
import functools

import jax
import jax.numpy as jnp
from jax.experimental import pallas as pl
from jax.experimental.pallas import tpu as pltpu

BN_EPS = 1e-5
LANE = 128
SUBLANE = 8


def _round_up(x, m):
    return ((x + m - 1) // m) * m


def _vmem_capacity_bytes():
    """Best-effort physical VMEM query (v5e/v6e: 128 MiB, v7x: 64 MiB per TC)."""
    try:
        cap = getattr(pltpu.get_tpu_info(), "vmem_capacity_bytes", None)
        if cap:
            return int(cap)
    except Exception:
        pass
    return 64 << 20  # conservative fallback (v7x per-TensorCore)


def _single_buffered():
    """pipeline_mode for grid-constant blocks: halves their VMEM residency."""
    try:
        return pl.Buffered(1)
    except Exception:  # very old jax: fall back to default double buffering
        return None


# ----------------------------- fused Pallas kernels -----------------------------

def _make_fused_classifier_kernel(num_hidden, compute_dtype):
    """Whole-stack kernel, all weights resident in VMEM.

    Ref layout: (x, w0, b0, w1, b1, ..., w_final, b_final, out)
    Hidden layers: h = relu(h @ w_i + b_i)   (BN folded, Dropout = identity)
    Final layer  : o = h @ w_f + b_f         (lane-padded to a multiple of 128)
    """

    def kernel(*refs):
        x_ref, o_ref = refs[0], refs[-1]
        wb = refs[1:-1]
        h = x_ref[...].astype(compute_dtype)
        for i in range(num_hidden):
            y = jnp.dot(h, wb[2 * i][...], preferred_element_type=jnp.float32)
            h = jnp.maximum(y + wb[2 * i + 1][...], 0.0).astype(compute_dtype)
        o_ref[...] = (jnp.dot(h, wb[-2][...], preferred_element_type=jnp.float32)
                      + wb[-1][...])

    return kernel


def _make_ktiled_classifier_kernel(num_hidden, compute_dtype):
    """Same stack, but the first (largest) contraction is K-tiled on grid axis 1.

    Ref layout: (x_kslab, w0_kslab, b0, w1, b1, ..., w_final, b_final, out, acc)
    """

    def kernel(*refs):
        x_ref = refs[0]
        o_ref, acc_ref = refs[-2], refs[-1]
        wb = refs[1:-2]
        k = pl.program_id(1)

        @pl.when(k == 0)
        def _init():
            acc_ref[...] = jnp.zeros_like(acc_ref)

        acc_ref[...] += jnp.dot(x_ref[...].astype(compute_dtype), wb[0][...],
                                preferred_element_type=jnp.float32)

        @pl.when(k == pl.num_programs(1) - 1)
        def _finalize():
            y0 = acc_ref[...] + wb[1][...]
            if num_hidden == 0:
                # The (K-tiled) first layer is the final Linear: no activation.
                o_ref[...] = y0
            else:
                h = jnp.maximum(y0, 0.0).astype(compute_dtype)
                for i in range(1, num_hidden):
                    y = jnp.dot(h, wb[2 * i][...],
                                preferred_element_type=jnp.float32)
                    h = jnp.maximum(y + wb[2 * i + 1][...], 0.0).astype(compute_dtype)
                o_ref[...] = (jnp.dot(h, wb[-2][...],
                                      preferred_element_type=jnp.float32)
                              + wb[-1][...])

    return kernel


# ----------------------------- Classifier params -------------------------------

def classifier_dims(num_in, num_out, rate=1):
    """Replicate the __init__ while-loop to derive per-layer feature sizes."""
    dims = []
    temp = num_in
    while num_out < (temp >> rate):
        dims.append((temp, temp >> rate))   # hidden Linear (+ Dropout/BN/ReLU)
        temp >>= rate
    return dims, (temp, num_out)            # final Linear, no activation


def init_classifier_params(key, num_in, num_out, rate=1):
    hidden_dims, final_dim = classifier_dims(num_in, num_out, rate)
    params = {"hidden": [], "final": None}

    def init_linear(k, fin, fout):
        kw, kb = jax.random.split(k)
        bound = 1.0 / jnp.sqrt(fin)
        # Weight stored pre-transposed as (Fin, Fout) so the kernel does x @ W.
        w = jax.random.uniform(kw, (fin, fout), jnp.float32, -bound, bound)
        b = jax.random.uniform(kb, (1, fout), jnp.float32, -bound, bound)
        return w, b

    keys = jax.random.split(key, len(hidden_dims) + 1)
    for k, (fin, fout) in zip(keys[:-1], hidden_dims):
        w, b = init_linear(k, fin, fout)
        params["hidden"].append({
            "w": w, "b": b,
            # BatchNorm1d default init
            "gamma": jnp.ones((1, fout), jnp.float32),
            "beta": jnp.zeros((1, fout), jnp.float32),
            "rmean": jnp.zeros((1, fout), jnp.float32),
            "rvar": jnp.ones((1, fout), jnp.float32),
        })

    fin, fout = final_dim
    w, b = init_linear(keys[-1], fin, fout)
    params["final"] = {"w": w, "b": b}
    return params


def _fold_bn_into_linear(layer):
    """Eval-mode BN fold (trace-time, free at runtime)."""
    scale = layer["gamma"] / jnp.sqrt(layer["rvar"] + BN_EPS)   # (1, Fout)
    shift = layer["beta"] - layer["rmean"] * scale
    w = layer["w"] * scale                                      # (Fin,Fout)*(1,Fout)
    b = layer["b"] * scale + shift
    return w, b


# ----------------------------- forward ------------------------------------------

def classifier_forward(params, x, *, compute_dtype=jnp.bfloat16, batch_tile=None,
                       first_layer_k_tile=None, k_tile_threshold_bytes=16 << 20):
    """Single fused pallas_call for the full classifier stack (eval mode).

    TODO(synk): training-mode dropout / batch-statistics BN not implemented.
    TODO(synk): on v7x, fp8 weight storage could further halve first-layer VMEM/DMA.
    """
    B, Fin = x.shape
    num_out = params["final"]["w"].shape[1]
    vmem_cap = _vmem_capacity_bytes()
    w_dtype = jnp.dtype(compute_dtype)

    # ---- fold BN into hidden linears, cast weights, lane-pad final layer -------
    hidden_wb = []
    for layer in params["hidden"]:
        w, b = _fold_bn_into_linear(layer)
        hidden_wb.append((w.astype(w_dtype), b))        # bias stays f32 (epilogue)
    num_hidden = len(hidden_wb)

    out_pad = _round_up(max(num_out, LANE), LANE)
    f_in = params["final"]["w"].shape[0]
    wf = jnp.zeros((f_in, out_pad), jnp.float32).at[:, :num_out].set(params["final"]["w"])
    bf = jnp.zeros((1, out_pad), jnp.float32).at[:, :num_out].set(params["final"]["b"])
    wf = wf.astype(w_dtype)

    flat_wb = []
    for w, b in hidden_wb:
        flat_wb.extend((w, b))
    flat_wb.extend((wf, bf))
    w0 = flat_wb[0]

    # ---- batch tiling (no wrapper-side pad; boundary blocks are masked) --------
    if batch_tile is None:
        batch_tile = 512 if vmem_cap >= (96 << 20) else 256   # bigger on v5e/v6e
    tile_b = min(_round_up(batch_tile, SUBLANE), _round_up(B, SUBLANE))
    if B >= 16:   # keep >= 2 batch steps so both v7x TensorCores get work
        tile_b = min(tile_b, _round_up(pl.cdiv(B, 2), SUBLANE))
    grid_b = pl.cdiv(B, tile_b)

    # ---- K tile for the first contraction (only when W0 is too big) ------------
    tk = first_layer_k_tile
    if (tk is None and w0.size * w0.dtype.itemsize > k_tile_threshold_bytes
            and Fin % LANE == 0 and Fin > LANE):
        tk = LANE
        cand = 2 * LANE
        while cand < Fin:
            if (Fin % cand == 0
                    and cand * w0.shape[1] * w0.dtype.itemsize <= k_tile_threshold_bytes):
                tk = cand
            cand += LANE
    if tk is not None and (tk % LANE != 0 or Fin % tk != 0 or tk >= Fin):
        tk = None                                    # fall back to whole-array W0

    const_mode = _single_buffered()

    # ---- BlockSpecs / grid ------------------------------------------------------
    if tk is None:
        grid = (grid_b,)
        dim_sem = ("parallel",)
        in_specs = [pl.BlockSpec((tile_b, Fin), lambda i: (i, 0))]
        for a in flat_wb:
            in_specs.append(pl.BlockSpec(a.shape, lambda i: (0, 0),
                                         pipeline_mode=const_mode))
        out_spec = pl.BlockSpec((tile_b, out_pad), lambda i: (i, 0))
        scratch = []
        kernel = _make_fused_classifier_kernel(num_hidden, compute_dtype)
    else:
        grid = (grid_b, Fin // tk)
        dim_sem = ("parallel", "arbitrary")
        in_specs = [pl.BlockSpec((tile_b, tk), lambda i, k: (i, k)),
                    pl.BlockSpec((tk, w0.shape[1]), lambda i, k: (k, 0))]
        for a in flat_wb[1:]:
            in_specs.append(pl.BlockSpec(a.shape, lambda i, k: (0, 0),
                                         pipeline_mode=const_mode))
        out_spec = pl.BlockSpec((tile_b, out_pad), lambda i, k: (i, 0))
        scratch = [pltpu.VMEM((tile_b, w0.shape[1]), jnp.float32)]
        kernel = _make_ktiled_classifier_kernel(num_hidden, compute_dtype)

    # ---- VMEM budget: resident weights + double-buffered io tiles + headroom ----
    def _nbytes(a):
        return int(a.size) * a.dtype.itemsize

    weights_resident = sum(_nbytes(a) for a in flat_wb)
    if tk is not None:   # only two K-slabs of W0 resident instead of the whole array
        weights_resident += 2 * tk * w0.shape[1] * w0.dtype.itemsize - _nbytes(w0)
    io_resident = 2 * tile_b * ((tk or Fin) * x.dtype.itemsize + out_pad * 4)
    widths = [w.shape[1] for w, _ in hidden_wb] + [out_pad]
    act_resident = tile_b * 4 * (Fin + 2 * sum(widths))
    need = weights_resident + io_resident + act_resident
    vmem_limit = int(min(int(vmem_cap * 0.9),
                         max(32 << 20, need * 3 // 2 + (4 << 20))))

    out = pl.pallas_call(
        kernel,
        out_shape=jax.ShapeDtypeStruct((B, out_pad), jnp.float32),
        grid=grid,
        in_specs=in_specs,
        out_specs=out_spec,
        scratch_shapes=scratch,
        compiler_params=pltpu.CompilerParams(
            dimension_semantics=dim_sem,
            vmem_limit_bytes=vmem_limit),
    )(x, *flat_wb)

    return out[:, :num_out]


# ----------------------------- plain-JAX reference ------------------------------

def classifier_reference(params, x):
    """Un-fused f32 reference (explicit Linear -> BN(eval) -> ReLU)."""
    h = x
    for layer in params["hidden"]:
        y = h @ layer["w"] + layer["b"]
        y = (y - layer["rmean"]) / jnp.sqrt(layer["rvar"] + BN_EPS)
        y = y * layer["gamma"] + layer["beta"]
        h = jnp.maximum(y, 0.0)
    f = params["final"]
    return h @ f["w"] + f["b"]


# ----------------------------- main ----------------------------------------------

if __name__ == "__main__":
    key = jax.random.PRNGKey(0)
    kx1, kp1, kx2, kp2 = jax.random.split(key, 4)

    # 1) Small whole-array path, f32 compute -> tight check vs reference.
    num_in, num_out, rate = 32, 2, 1        # layers: 32 -> 16 -> 8 -> 4 -> 2
    batch = 8
    x1 = jax.random.normal(kx1, (batch, num_in), jnp.float32)
    p1 = init_classifier_params(kp1, num_in, num_out, rate)

    fwd_f32 = jax.jit(functools.partial(classifier_forward,
                                        compute_dtype=jnp.float32))
    out1 = jax.block_until_ready(fwd_f32(p1, x1))
    ref1 = classifier_reference(p1, x1)
    assert out1.shape == (batch, num_out), out1.shape
    assert jnp.allclose(out1, ref1, atol=1e-5, rtol=1e-5), "f32 mismatch vs reference"

    # 2) Production path: bf16 matmul inputs + K-tiled first layer + multi-tile
    #    batch (exercises boundary blocks, Buffered(1) weights, f32 accumulator).
    num_in2, num_out2, rate2 = 256, 2, 2    # layers: 256 -> 64 -> 16 -> 4 -> 2
    batch2 = 24                             # B >= 16 -> 2 batch tiles (16 + boundary)
    x2 = jax.random.normal(kx2, (batch2, num_in2), jnp.float32)
    p2 = init_classifier_params(kp2, num_in2, num_out2, rate2)

    fwd_bf16 = jax.jit(functools.partial(classifier_forward,
                                         compute_dtype=jnp.bfloat16,
                                         first_layer_k_tile=128))
    out2 = jax.block_until_ready(fwd_bf16(p2, x2))
    ref2 = classifier_reference(p2, x2)
    assert out2.shape == (batch2, num_out2), out2.shape
    assert jnp.allclose(out2, ref2, atol=5e-2, rtol=5e-2), "bf16 mismatch vs reference"

    print("KERNEL_OK")
</pallas_src>

<mosaic_0001>
module attributes {stable_mosaic.version = 11 : i64} {
  func.func @kernel(%arg0: i32, %arg1: memref<8x32xf32, #tpu.memory_space<vmem>>, %arg2: memref<32x16xf32, #tpu.memory_space<vmem>>, %arg3: memref<1x16xf32, #tpu.memory_space<vmem>>, %arg4: memref<16x8xf32, #tpu.memory_space<vmem>>, %arg5: memref<1x8xf32, #tpu.memory_space<vmem>>, %arg6: memref<8x4xf32, #tpu.memory_space<vmem>>, %arg7: memref<1x4xf32, #tpu.memory_space<vmem>>, %arg8: memref<4x128xf32, #tpu.memory_space<vmem>>, %arg9: memref<1x128xf32, #tpu.memory_space<vmem>>, %arg10: memref<8x128xf32, #tpu.memory_space<vmem>>) attributes {dimension_semantics = [#tpu.dimension_semantics<parallel>], iteration_bounds = array<i64: 1>, scalar_prefetch = 0 : i64, scratch_operands = 0 : i64, tpu.core_type = #tpu.core_type<tc>, window_params = [{transform_indices = @transform_0, window_bounds = array<i64: 8, 32>}, {pipeline_mode = #tpu.pipeline_mode<synchronous>, transform_indices = @transform_1, window_bounds = array<i64: 32, 16>}, {pipeline_mode = #tpu.pipeline_mode<synchronous>, transform_indices = @transform_2, window_bounds = array<i64: 1, 16>}, {pipeline_mode = #tpu.pipeline_mode<synchronous>, transform_indices = @transform_3, window_bounds = array<i64: 16, 8>}, {pipeline_mode = #tpu.pipeline_mode<synchronous>, transform_indices = @transform_4, window_bounds = array<i64: 1, 8>}, {pipeline_mode = #tpu.pipeline_mode<synchronous>, transform_indices = @transform_5, window_bounds = array<i64: 8, 4>}, {pipeline_mode = #tpu.pipeline_mode<synchronous>, transform_indices = @transform_6, window_bounds = array<i64: 1, 4>}, {pipeline_mode = #tpu.pipeline_mode<synchronous>, transform_indices = @transform_7, window_bounds = array<i64: 4, 128>}, {pipeline_mode = #tpu.pipeline_mode<synchronous>, transform_indices = @transform_8, window_bounds = array<i64: 1, 128>}, {transform_indices = @transform_9, window_bounds = array<i64: 8, 128>}]} {
    %c0 = arith.constant 0 : index
    %c0_0 = arith.constant 0 : index
    %0 = vector.load %arg1[%c0, %c0_0] : memref<8x32xf32, #tpu.memory_space<vmem>>, vector<8x32xf32>
    %c0_1 = arith.constant 0 : index
    %c0_2 = arith.constant 0 : index
    %1 = vector.load %arg2[%c0_1, %c0_2] : memref<32x16xf32, #tpu.memory_space<vmem>>, vector<32x16xf32>
    %cst = arith.constant dense<0.000000e+00> : vector<8x16xf32>
    %2 = tpu.matmul %0, %1, %cst {dimension_numbers = #tpu.dot_dimension_numbers<[1], [0], [0], [1], [0, 0, 1, 1], [], []>} : vector<8x32xf32>, vector<32x16xf32>, vector<8x16xf32> -> vector<8x16xf32>
    %c0_3 = arith.constant 0 : index
    %c0_4 = arith.constant 0 : index
    %3 = vector.load %arg3[%c0_3, %c0_4] : memref<1x16xf32, #tpu.memory_space<vmem>>, vector<1x16xf32>
    %4 = vector.broadcast %3 : vector<1x16xf32> to vector<8x16xf32>
    %5 = arith.addf %2, %4 : vector<8x16xf32>
    %cst_5 = arith.constant 0.000000e+00 : f32
    %6 = vector.broadcast %cst_5 : f32 to vector<8x16xf32>
    %7 = arith.maximumf %5, %6 : vector<8x16xf32>
    %c0_6 = arith.constant 0 : index
    %c0_7 = arith.constant 0 : index
    %8 = vector.load %arg4[%c0_6, %c0_7] : memref<16x8xf32, #tpu.memory_space<vmem>>, vector<16x8xf32>
    %cst_8 = arith.constant dense<0.000000e+00> : vector<8x8xf32>
    %9 = tpu.matmul %7, %8, %cst_8 {dimension_numbers = #tpu.dot_dimension_numbers<[1], [0], [0], [1], [0, 0, 1, 1], [], []>} : vector<8x16xf32>, vector<16x8xf32>, vector<8x8xf32> -> vector<8x8xf32>
    %c0_9 = arith.constant 0 : index
    %c0_10 = arith.constant 0 : index
    %10 = vector.load %arg5[%c0_9, %c0_10] : memref<1x8xf32, #tpu.memory_space<vmem>>, vector<1x8xf32>
    %11 = vector.broadcast %10 : vector<1x8xf32> to vector<8x8xf32>
    %12 = arith.addf %9, %11 : vector<8x8xf32>
    %cst_11 = arith.constant 0.000000e+00 : f32
    %13 = vector.broadcast %cst_11 : f32 to vector<8x8xf32>
    %14 = arith.maximumf %12, %13 : vector<8x8xf32>
    %c0_12 = arith.constant 0 : index
    %c0_13 = arith.constant 0 : index
    %15 = vector.load %arg6[%c0_12, %c0_13] : memref<8x4xf32, #tpu.memory_space<vmem>>, vector<8x4xf32>
    %cst_14 = arith.constant dense<0.000000e+00> : vector<8x4xf32>
    %16 = tpu.matmul %14, %15, %cst_14 {dimension_numbers = #tpu.dot_dimension_numbers<[1], [0], [0], [1], [0, 0, 1, 1], [], []>} : vector<8x8xf32>, vector<8x4xf32>, vector<8x4xf32> -> vector<8x4xf32>
    %c0_15 = arith.constant 0 : index
    %c0_16 = arith.constant 0 : index
    %17 = vector.load %arg7[%c0_15, %c0_16] : memref<1x4xf32, #tpu.memory_space<vmem>>, vector<1x4xf32>
    %18 = vector.broadcast %17 : vector<1x4xf32> to vector<8x4xf32>
    %19 = arith.addf %16, %18 : vector<8x4xf32>
    %cst_17 = arith.constant 0.000000e+00 : f32
    %20 = vector.broadcast %cst_17 : f32 to vector<8x4xf32>
    %21 = arith.maximumf %19, %20 : vector<8x4xf32>
    %c0_18 = arith.constant 0 : index
    %c0_19 = arith.constant 0 : index
    %22 = vector.load %arg8[%c0_18, %c0_19] : memref<4x128xf32, #tpu.memory_space<vmem>>, vector<4x128xf32>
    %cst_20 = arith.constant dense<0.000000e+00> : vector<8x128xf32>
    %23 = tpu.matmul %21, %22, %cst_20 {dimension_numbers = #tpu.dot_dimension_numbers<[1], [0], [0], [1], [0, 0, 1, 1], [], []>} : vector<8x4xf32>, vector<4x128xf32>, vector<8x128xf32> -> vector<8x128xf32>
    %c0_21 = arith.constant 0 : index
    %c0_22 = arith.constant 0 : index
    %24 = vector.load %arg9[%c0_21, %c0_22] : memref<1x128xf32, #tpu.memory_space<vmem>>, vector<1x128xf32>
    %25 = vector.broadcast %24 : vector<1x128xf32> to vector<8x128xf32>
    %26 = arith.addf %23, %25 : vector<8x128xf32>
    %c0_23 = arith.constant 0 : index
    %c0_24 = arith.constant 0 : index
    %27 = vector.load %arg10[%c0_23, %c0_24] : memref<8x128xf32, #tpu.memory_space<vmem>>, vector<8x128xf32>
    tpu.vector_store %arg10[%c0_23, %c0_24], %26 {strides = array<i32>} : memref<8x128xf32, #tpu.memory_space<vmem>>, vector<8x128xf32>,
    return
  }
  func.func @transform_0(%arg0: i32) -> (i32, i32) {
    %c0_i32 = arith.constant 0 : i32
    %c0_i32_0 = arith.constant 0 : i32
    return %arg0, %c0_i32 : i32, i32
  }
  func.func @transform_1(%arg0: i32) -> (i32, i32) {
    %c0_i32 = arith.constant 0 : i32
    %c0_i32_0 = arith.constant 0 : i32
    %c0_i32_1 = arith.constant 0 : i32
    return %c0_i32, %c0_i32_0 : i32, i32
  }
  func.func @transform_2(%arg0: i32) -> (i32, i32) {
    %c0_i32 = arith.constant 0 : i32
    %c0_i32_0 = arith.constant 0 : i32
    %c0_i32_1 = arith.constant 0 : i32
    return %c0_i32, %c0_i32_0 : i32, i32
  }
  func.func @transform_3(%arg0: i32) -> (i32, i32) {
    %c0_i32 = arith.constant 0 : i32
    %c0_i32_0 = arith.constant 0 : i32
    %c0_i32_1 = arith.constant 0 : i32
    return %c0_i32, %c0_i32_0 : i32, i32
  }
  func.func @transform_4(%arg0: i32) -> (i32, i32) {
    %c0_i32 = arith.constant 0 : i32
    %c0_i32_0 = arith.constant 0 : i32
    %c0_i32_1 = arith.constant 0 : i32
    return %c0_i32, %c0_i32_0 : i32, i32
  }
  func.func @transform_5(%arg0: i32) -> (i32, i32) {
    %c0_i32 = arith.constant 0 : i32
    %c0_i32_0 = arith.constant 0 : i32
    %c0_i32_1 = arith.constant 0 : i32
    return %c0_i32, %c0_i32_0 : i32, i32
  }
  func.func @transform_6(%arg0: i32) -> (i32, i32) {
    %c0_i32 = arith.constant 0 : i32
    %c0_i32_0 = arith.constant 0 : i32
    %c0_i32_1 = arith.constant 0 : i32
    return %c0_i32, %c0_i32_0 : i32, i32
  }
  func.func @transform_7(%arg0: i32) -> (i32, i32) {
    %c0_i32 = arith.constant 0 : i32
    %c0_i32_0 = arith.constant 0 : i32
    %c0_i32_1 = arith.constant 0 : i32
    return %c0_i32, %c0_i32_0 : i32, i32
  }
  func.func @transform_8(%arg0: i32) -> (i32, i32) {
    %c0_i32 = arith.constant 0 : i32
    %c0_i32_0 = arith.constant 0 : i32
    %c0_i32_1 = arith.constant 0 : i32
    return %c0_i32, %c0_i32_0 : i32, i32
  }
  func.func @transform_9(%arg0: i32) -> (i32, i32) {
    %c0_i32 = arith.constant 0 : i32
    %c0_i32_0 = arith.constant 0 : i32
    return %arg0, %c0_i32 : i32, i32
  }
}

</mosaic_0001>

<bundles_post_ra>
// kernel: classifier_forward.1
= control target key start
LH: loop header
LB: loop body
LE: loop exit
PB: predicated region body
PF: predicated region fallthrough
CT: control target
= control target key end

     0   :  { %vm41_vm0 = vcmask 261120   ;;  %vm72_vm1 = vcmask 130048   ;;  %vm102_vm2 = vcmask 64512   ;;  %vm136_vm3 = vcmask 1043456   ;;  %s266_s1 = inlined_call_operand.vmem [shape: f32[32,16], index: 1, kind: input, shape index: {}]   ;;  %s267_s2 = inlined_call_operand.vmem [shape: f32[1,16], index: 2, kind: input, shape index: {}]   ;;  %s268_s0 = inlined_call_operand.vmem [shape: f32[8,32], index: 0, kind: input, shape index: {}]   ;;  %s269_s4 = inlined_call_operand.vmem [shape: f32[1,8], index: 4, kind: input, shape index: {}]   ;;  %s270_s3 = inlined_call_operand.vmem [shape: f32[16,8], index: 3, kind: input, shape index: {}]   ;;  %s271_s6 = inlined_call_operand.vmem [shape: f32[1,4], index: 6, kind: input, shape index: {}]   ;;  %s272_s5 = inlined_call_operand.vmem [shape: f32[8,4], index: 5, kind: input, shape index: {}]   ;;  %s273_s8 = inlined_call_operand.vmem [shape: f32[1,128], index: 8, kind: input, shape index: {}]   ;;  %s274_s7 = inlined_call_operand.vmem [shape: f32[4,128], index: 7, kind: input, shape index: {}]   ;;  %s275_s9 = inlined_call_operand.vmem [shape: f32[8,128], index: 9, kind: output, shape index: {}]  }
   0x1   :  { %v36_v0 = vld [vmem:[%s266_s1 + $0x18] sm:$0xff]  ;;  %v35_v1 = vld [vmem:[%s266_s1 + $0x10] sm:$0xff]  ;;  %v34_v2 = vld [vmem:[%s266_s1 + $0x8] sm:$0xff]  ;;  %vm132_vm4 = vcmask 31744  }
   0x2   :  { %57 = vmatpush.msra.mxu0 %v36_v0  ;;  %v33_v3 = vld [vmem:[%s266_s1] sm:$0xff]  ;;  %v67_v5 = vld [vmem:[%s270_s3 + $0x8] sm:$0xff] }
   0x3   :  { %v32_v4 = vld [vmem:[%s268_s0] sm:$0xff]  ;;  %90 = vmatpush.msra.mxu1 %v67_v5 }
   0x4   :  { %58 = vmatpush.msra.mxu0 %v35_v1  ;;  %v66_v6 = vld [vmem:[%s270_s3] sm:$0xff] }
   0x5   :  { %91 = vmatpush.msra.mxu1 %v66_v6  ;;  %v170_v7 = vld [vmem:[%s267_s2] ss:$0 sm:$0xff] }
   0x6   :  { %59 = vmatpush.msra.mxu0 %v34_v2  ;;  %v97_v11 = vld [vmem:[%s272_s5] sm:$0xff] }
   0x7   :  { %121 = vmatpush.msra.mxu2 %v97_v11  ;;  %v171_v12 = vld [vmem:[%s269_s4] ss:$0 sm:$0xff] }
   0x8   :  { %60 = vmatpush.msra.mxu0 %v33_v3  ;;  %v127_v16 = vld [vmem:[%s274_s7] sm:$0xf] }
   0x9   :  { %165 = vmatmul.msk.f32.vlgmr.msra.gmra.mxu0 %vm41_vm0, %v32_v4  ;;  %168 = vmatpush.msk.msra.mxu3 %vm136_vm3, %v127_v16  ;;  %v172_v17 = vld [vmem:[%s271_s6] ss:$0 sm:$0xff] }
   0xa   :  { %v173_v21 = vld [vmem:[%s273_s8] ss:$0 sm:$0xff] }
  0x86   :  { %v62_v8 = vpop.f32.mrf.mxu0 }
  0x87   :  { %v63_v9 = vadd.f32 %v170_v7, %v62_v8 }
  0x89   :  { %v65_v10 = vmax.f32 %v63_v9, 0.0 }
  0x8b   :  { %166 = vmatmul.msk.f32.vlgmr.msra.gmra.mxu1 %vm72_vm1, %v65_v10 }
 0x108   :  { %v93_v13 = vpop.f32.mrf.mxu1 }
 0x109   :  { %v94_v14 = vadd.f32 %v171_v12, %v93_v13 }
 0x10b   :  { %v96_v15 = vmax.f32 %v94_v14, 0.0 }
 0x10d   :  { %167 = vmatmul.msk.f32.vlgmr.msra.gmra.mxu2 %vm102_vm2, %v96_v15 }
 0x190   :  { %v123_v18 = vpop.f32.mrf.mxu2 }
 0x191   :  { %v124_v19 = vadd.f32 %v172_v17, %v123_v18 }
 0x193   :  { %v126_v20 = vmax.f32 %v124_v19, 0.0 }
 0x195   :  { %169 = vmatmul.msk.f32.vlgmr.msra.gmra.mxu3 %vm132_vm4, %v126_v20 }
 0x218   :  { %v157_v22 = vpop.f32.mrf.mxu3 }
 0x219   :  { %v158_v23 = vadd.f32 %v173_v21, %v157_v22 }
 0x21b   :  { %160 = vst [vmem:[%s275_s9] sm:$0xff] %v158_v23 }

</bundles_post_ra>
